<compile_context>
chip_gen: v7x
topology: tpu7x:2x2x1
jax: 0.10.0
libtpu: 0.0.40
codegen_flags: <defaults>
</compile_context>

<pallas_src>
import functools

import jax
import jax.numpy as jnp
from jax.experimental import pallas as pl
from jax.experimental.pallas import tpu as pltpu


def _round_up(x, m):
    return ((x + m - 1) // m) * m


def _vfl_kernel(pred_ref, gt_ref, label_ref, out_ref, *, alpha, gamma,
                total_rows, row_tile):
    i = pl.program_id(0)
    rows, cols = pred_ref.shape                # static block shape

    x = pred_ref[...].astype(jnp.float32)      # logits
    z = gt_ref[...].astype(jnp.float32)        # gt scores (targets)
    lbl = label_ref[...].astype(jnp.float32)   # labels (0/1)

    # Ragged last tile: mask invalid rows BEFORE any exp/log so OOB garbage (possibly
    # Inf/NaN bit patterns) cannot leak into the partial sums via NaN*0.
    # pred=-1e4, gt=label=0 contributes exactly 0 (exp underflows to 0, BCE term is 0).
    if total_rows % row_tile != 0:
        rem = total_rows - i * row_tile
        row_idx = jax.lax.broadcasted_iota(jnp.int32, (rows, cols), 0)
        valid = row_idx < rem
        x = jnp.where(valid, x, -1e4)
        z = jnp.where(valid, z, 0.0)
        lbl = jnp.where(valid, lbl, 0.0)

    # Shared transcendentals: 1 exp + 1 log + 1 approx reciprocal per element.
    e = jnp.exp(-jnp.abs(x))                       # exp(-|x|)          (EUP exp)
    log1p_e = jnp.log1p(e)                         # log(1 + exp(-|x|)) (EUP log)
    inv = pl.reciprocal(1.0 + e, approx=True)      # ~1/(1+e)           (EUP vrcp)
    # One Newton step on the VPU (EUP is the busier slot; VPU has slack) to recover
    # near-f32 accuracy from the approximate reciprocal.
    inv = inv * (2.0 - (1.0 + e) * inv)
    sig = jnp.where(x >= 0, inv, e * inv)          # sigmoid(x)

    # sigmoid(x) ** gamma without exp(gamma * log(sig)) when gamma is a small integer.
    g = float(gamma)
    if g == 2.0:
        sig_pow = sig * sig
    elif g.is_integer() and g >= 0:
        p = int(g)
        if p == 0:
            sig_pow = jnp.ones_like(sig)
        else:
            sig_pow = None
            base = sig
            while p:
                if p & 1:
                    sig_pow = base if sig_pow is None else sig_pow * base
                p >>= 1
                if p:
                    base = base * base
    else:
        sig_pow = jnp.power(sig, jnp.float32(g))

    # Varifocal weight.
    weight = alpha * sig_pow * (1.0 - lbl) + z * lbl

    # Numerically-stable binary_cross_entropy_with_logits, reduction='none':
    #   max(x, 0) - x*z + log(1 + exp(-|x|))
    bce = jnp.maximum(x, 0.0) - x * z + log1p_e

    v = bce * weight                                           # (rows, cols), f32

    # Fold rows into an (8, cols) lane-dense partial (pure vreg adds; the reshape matches
    # the native sublane tiling).  The final scalar reduce happens outside the kernel.
    out_ref[...] = v.reshape(rows // 8, 8, cols).sum(axis=0)   # (8, cols)


def _default_vmem_limit_bytes():
    try:
        cap = pltpu.get_tpu_info().vmem_capacity_bytes
    except Exception:
        cap = 64 * 1024 * 1024   # assume v7x (smallest per-TC VMEM) if query fails
    # ~48 MiB on v7x (64 MiB physical), ~96 MiB on v5e/v6e (128 MiB physical).
    return max(32 * 1024 * 1024, min(cap * 3 // 4, 96 * 1024 * 1024))


def varifocal_loss(pred_score, gt_score, label, alpha=0.75, gamma=2.0,
                   row_tile=None, vmem_limit_bytes=None):
    """Pallas TPU implementation of VarifocalLoss.forward. Returns a scalar (f32).

    Inputs may be f32 or bf16; bf16 halves HBM traffic (the kernel is memory-bound) and
    is upcast to f32 inside the kernel.  `label` is exactly representable in bf16; using
    bf16 for pred/gt trades ~3 decimal digits on those inputs for ~2x bandwidth.
    """
    N, C = pred_score.shape

    # Lane-dense repack: if C is not a multiple of 128 but the total element count is,
    # view the contiguous (N, C) buffers as (N*C/128, 128) — a no-copy row-major reshape.
    # The loss only needs sum_all(bce*weight)/C, so the element grouping is irrelevant.
    if C % 128 != 0 and (N * C) % 128 == 0:
        R, Cb = (N * C) // 128, 128
        pred2 = pred_score.reshape(R, Cb)
        gt2 = gt_score.reshape(R, Cb)
        lbl2 = label.reshape(R, Cb)
    else:
        R, Cb = N, C
        pred2, gt2, lbl2 = pred_score, gt_score, label

    if vmem_limit_bytes is None:
        vmem_limit_bytes = _default_vmem_limit_bytes()

    # ---- pick a row tile from a temp-count-aware VMEM budget ----
    if row_tile is None:
        in_bytes_per_row = sum(jnp.dtype(a.dtype).itemsize for a in (pred2, gt2, lbl2)) * Cb
        # 2x double-buffered input pipelining + ~8 live f32 (row_tile, Cb) temporaries
        # (x, z, lbl, e, log1p_e, sig/sig_pow, weight, bce/v) at the widest point.
        bytes_per_row = 2 * in_bytes_per_row + 8 * 4 * Cb
        budget = vmem_limit_bytes * 7 // 10
        row_tile = int(budget // max(bytes_per_row, 1))
        row_tile = max(8, min(4096, row_tile))
    row_tile = max(8, (row_tile // 8) * 8)
    row_tile = min(row_tile, _round_up(R, 8))

    # Guarantee >= 2 grid steps when there is enough work so the "parallel" grid axis can
    # use both v7x TensorCores (harmless on single-TC v5e/v6e).
    if R >= 16 and pl.cdiv(R, row_tile) < 2:
        row_tile = max(8, _round_up(pl.cdiv(R, 2), 8))

    num_tiles = pl.cdiv(R, row_tile)

    kernel = functools.partial(
        _vfl_kernel, alpha=float(alpha), gamma=float(gamma),
        total_rows=int(R), row_tile=int(row_tile))

    # Per-tile lane-dense (8, Cb) partial sums; independent per grid step -> "parallel".
    partials = pl.pallas_call(
        kernel,
        out_shape=jax.ShapeDtypeStruct((num_tiles, 8, Cb), jnp.float32),
        grid_spec=pltpu.PrefetchScalarGridSpec(
            num_scalar_prefetch=0,
            grid=(num_tiles,),
            in_specs=[
                pl.BlockSpec((row_tile, Cb), lambda i: (i, 0)),
                pl.BlockSpec((row_tile, Cb), lambda i: (i, 0)),
                pl.BlockSpec((row_tile, Cb), lambda i: (i, 0)),
            ],
            out_specs=pl.BlockSpec((None, 8, Cb), lambda i: (i, 0, 0)),
        ),
        compiler_params=pltpu.CompilerParams(
            dimension_semantics=("parallel",),
            vmem_limit_bytes=int(vmem_limit_bytes),
        ),
    )(pred2, gt2, lbl2)

    # mean(1) over the ORIGINAL class count then sum over rows == total sum / C.
    return jnp.sum(partials) * jnp.float32(1.0 / C)


def varifocal_loss_ref(pred_score, gt_score, label, alpha=0.75, gamma=2.0):
    """Pure-JAX reference matching the PyTorch semantics."""
    x = pred_score.astype(jnp.float32)
    z = gt_score.astype(jnp.float32)
    lbl = label.astype(jnp.float32)
    weight = alpha * jax.nn.sigmoid(x) ** gamma * (1.0 - lbl) + z * lbl
    bce = jnp.maximum(x, 0.0) - x * z + jnp.log1p(jnp.exp(-jnp.abs(x)))
    return jnp.sum(jnp.mean(bce * weight, axis=1))


if __name__ == "__main__":
    key = jax.random.PRNGKey(0)

    def make_inputs(k, N, C, dtype):
        k1, k2, k3 = jax.random.split(k, 3)
        pred = (jax.random.normal(k1, (N, C), dtype=jnp.float32) * 2.0).astype(dtype)
        gt = jax.random.uniform(k2, (N, C), dtype=jnp.float32).astype(dtype)
        lbl = (jax.random.uniform(k3, (N, C)) > 0.9).astype(dtype)
        return pred, gt, lbl

    cases = [
        ("f32  N=50 C=128 (ragged rows, in-kernel mask)", 50, 128, jnp.float32),
        ("bf16 N=64 C=80  (lane-dense repack path)",      64, 80,  jnp.bfloat16),
        ("bf16 N=13 C=80  (odd-C fallback + mask)",       13, 80,  jnp.bfloat16),
    ]
    for idx, (name, N, C, dtype) in enumerate(cases):
        k = jax.random.fold_in(key, idx)
        pred, gt, lbl = make_inputs(k, N, C, dtype)
        loss = jax.block_until_ready(varifocal_loss(pred, gt, lbl))
        ref = jax.block_until_ready(varifocal_loss_ref(pred, gt, lbl))
        assert jnp.allclose(loss, ref, rtol=1e-3, atol=1e-3), (name, loss, ref)

    print("KERNEL_OK")
</pallas_src>

<mosaic_0001>
module attributes {stable_mosaic.version = 11 : i64} {
  func.func @_vfl_kernel(%arg0: i32, %arg1: memref<32x128xf32, #tpu.memory_space<vmem>>, %arg2: memref<32x128xf32, #tpu.memory_space<vmem>>, %arg3: memref<32x128xf32, #tpu.memory_space<vmem>>, %arg4: memref<1x8x128xf32, #tpu.memory_space<vmem>>) attributes {dimension_semantics = [#tpu.dimension_semantics<parallel>], iteration_bounds = array<i64: 2>, scalar_prefetch = 0 : i64, scratch_operands = 0 : i64, tpu.core_type = #tpu.core_type<tc>, window_params = [{transform_indices = @transform_0, window_bounds = array<i64: 32, 128>}, {transform_indices = @transform_1, window_bounds = array<i64: 32, 128>}, {transform_indices = @transform_2, window_bounds = array<i64: 32, 128>}, {transform_indices = @transform_3, window_bounds = array<i64: 1, 8, 128>}]} {
    %c0 = arith.constant 0 : index
    %c0_0 = arith.constant 0 : index
    %0 = vector.load %arg1[%c0, %c0_0] : memref<32x128xf32, #tpu.memory_space<vmem>>, vector<32x128xf32>
    %c0_1 = arith.constant 0 : index
    %c0_2 = arith.constant 0 : index
    %1 = vector.load %arg2[%c0_1, %c0_2] : memref<32x128xf32, #tpu.memory_space<vmem>>, vector<32x128xf32>
    %c0_3 = arith.constant 0 : index
    %c0_4 = arith.constant 0 : index
    %2 = vector.load %arg3[%c0_3, %c0_4] : memref<32x128xf32, #tpu.memory_space<vmem>>, vector<32x128xf32>
    %c32_i32 = arith.constant 32 : i32
    %3 = arith.muli %arg0, %c32_i32 : i32
    %c50_i32 = arith.constant 50 : i32
    %4 = arith.subi %c50_i32, %3 : i32
    %5 = tpu.iota {dimensions = array<i32: 0>} : vector<32x128xi32>
    %6 = vector.broadcast %4 : i32 to vector<32x128xi32>
    %7 = arith.cmpi slt, %5, %6 : vector<32x128xi32>
    %cst = arith.constant -1.000000e+04 : f32
    %8 = vector.broadcast %cst : f32 to vector<32x128xf32>
    %9 = arith.select %7, %0, %8 : vector<32x128xi1>, vector<32x128xf32>
    %cst_5 = arith.constant 0.000000e+00 : f32
    %10 = vector.broadcast %cst_5 : f32 to vector<32x128xf32>
    %11 = arith.select %7, %1, %10 : vector<32x128xi1>, vector<32x128xf32>
    %cst_6 = arith.constant 0.000000e+00 : f32
    %12 = vector.broadcast %cst_6 : f32 to vector<32x128xf32>
    %13 = arith.select %7, %2, %12 : vector<32x128xi1>, vector<32x128xf32>
    %14 = math.absf %9 : vector<32x128xf32>
    %cst_7 = arith.constant 0.000000e+00 : f32
    %15 = vector.broadcast %cst_7 : f32 to vector<32x128xf32>
    %16 = arith.subf %15, %14 : vector<32x128xf32>
    %17 = math.exp %16 : vector<32x128xf32>
    %18 = math.log1p %17 : vector<32x128xf32>
    %cst_8 = arith.constant 1.000000e+00 : f32
    %19 = vector.broadcast %cst_8 : f32 to vector<32x128xf32>
    %20 = arith.addf %19, %17 : vector<32x128xf32>
    %21 = tpu.reciprocal %20 {approx = true} : vector<32x128xf32> -> vector<32x128xf32>
    %cst_9 = arith.constant 1.000000e+00 : f32
    %22 = vector.broadcast %cst_9 : f32 to vector<32x128xf32>
    %23 = arith.addf %22, %17 : vector<32x128xf32>
    %24 = arith.mulf %23, %21 : vector<32x128xf32>
    %cst_10 = arith.constant 2.000000e+00 : f32
    %25 = vector.broadcast %cst_10 : f32 to vector<32x128xf32>
    %26 = arith.subf %25, %24 : vector<32x128xf32>
    %27 = arith.mulf %21, %26 : vector<32x128xf32>
    %cst_11 = arith.constant 0.000000e+00 : f32
    %28 = vector.broadcast %cst_11 : f32 to vector<32x128xf32>
    %29 = arith.cmpf oge, %9, %28 : vector<32x128xf32>
    %30 = arith.mulf %17, %27 : vector<32x128xf32>
    %31 = arith.select %29, %27, %30 : vector<32x128xi1>, vector<32x128xf32>
    %32 = arith.mulf %31, %31 : vector<32x128xf32>
    %cst_12 = arith.constant 7.500000e-01 : f32
    %33 = vector.broadcast %cst_12 : f32 to vector<32x128xf32>
    %34 = arith.mulf %33, %32 : vector<32x128xf32>
    %cst_13 = arith.constant 1.000000e+00 : f32
    %35 = vector.broadcast %cst_13 : f32 to vector<32x128xf32>
    %36 = arith.subf %35, %13 : vector<32x128xf32>
    %37 = arith.mulf %34, %36 : vector<32x128xf32>
    %38 = arith.mulf %11, %13 : vector<32x128xf32>
    %39 = arith.addf %37, %38 : vector<32x128xf32>
    %cst_14 = arith.constant 0.000000e+00 : f32
    %40 = vector.broadcast %cst_14 : f32 to vector<32x128xf32>
    %41 = arith.maximumf %9, %40 : vector<32x128xf32>
    %42 = arith.mulf %9, %11 : vector<32x128xf32>
    %43 = arith.subf %41, %42 : vector<32x128xf32>
    %44 = arith.addf %43, %18 : vector<32x128xf32>
    %45 = arith.mulf %44, %39 : vector<32x128xf32>
    %46 = vector.shape_cast %45 : vector<32x128xf32> to vector<4x8x128xf32>
    %cst_15 = arith.constant dense<0.000000e+00> : vector<8x128xf32>
    %47 = vector.multi_reduction <add>, %46, %cst_15 [0] : vector<4x8x128xf32> to vector<8x128xf32>
    %c0_16 = arith.constant 0 : index
    %c0_17 = arith.constant 0 : index
    %c0_18 = arith.constant 0 : index
    %48 = vector.load %arg4[%c0_16, %c0_17, %c0_18] : memref<1x8x128xf32, #tpu.memory_space<vmem>>, vector<1x8x128xf32>
    %49 = vector.shape_cast %48 : vector<1x8x128xf32> to vector<8x128xf32>
    %50 = vector.shape_cast %47 : vector<8x128xf32> to vector<1x8x128xf32>
    tpu.vector_store %arg4[%c0_16, %c0_17, %c0_18], %50 {strides = array<i32>} : memref<1x8x128xf32, #tpu.memory_space<vmem>>, vector<1x8x128xf32>,
    return
  }
  func.func @transform_0(%arg0: i32) -> (i32, i32) {
    %c0_i32 = arith.constant 0 : i32
    %c0_i32_0 = arith.constant 0 : i32
    return %arg0, %c0_i32 : i32, i32
  }
  func.func @transform_1(%arg0: i32) -> (i32, i32) {
    %c0_i32 = arith.constant 0 : i32
    %c0_i32_0 = arith.constant 0 : i32
    return %arg0, %c0_i32 : i32, i32
  }
  func.func @transform_2(%arg0: i32) -> (i32, i32) {
    %c0_i32 = arith.constant 0 : i32
    %c0_i32_0 = arith.constant 0 : i32
    return %arg0, %c0_i32 : i32, i32
  }
  func.func @transform_3(%arg0: i32) -> (i32, i32, i32) {
    %c0_i32 = arith.constant 0 : i32
    %c0_i32_0 = arith.constant 0 : i32
    %c0_i32_1 = arith.constant 0 : i32
    return %arg0, %c0_i32, %c0_i32_0 : i32, i32, i32
  }
}

</mosaic_0001>

<bundles_post_ra>
// kernel: tpu_custom_call.1
= control target key start
LH: loop header
LB: loop body
LE: loop exit
PB: predicated region body
PF: predicated region fallthrough
CT: control target
= control target key end

     0   :  { %8 = vsyncpa [#allocation3], 0  ;;  %s1302_s0 = inlined_call_operand.hbm [shape: f32[50,128], index: 0, kind: input, shape index: {}]   ;;  %s1303_s1 = inlined_call_operand.hbm [shape: f32[50,128], index: 1, kind: input, shape index: {}]   ;;  %s1304_s2 = inlined_call_operand.hbm [shape: f32[50,128], index: 2, kind: input, shape index: {}]   ;;  %s1305_s3 = inlined_call_operand.hbm [shape: f32[2,8,128], index: 3, kind: output, shape index: {}]  }
   0x1   :  { %10 = vsyncpa [#allocation3 + $0x1], 0 }
   0x2   :  { %11 = vsyncpa [#allocation6], 0 }
   0x3   :  { %13 = vsyncpa [#allocation6 + $0x1], 0 }
   0x4   :  { %14 = vsyncpa [#allocation4], 0 }
   0x5   :  { %16 = vsyncpa [#allocation4 + $0x1], 0  ;;  %s889_s12 = smov 0   ;;  %s891_s13 = smov 0  }
   0x6   :  { %s893_s14 = smov 0   ;;  %s895_s15 = smov 0  }
   0x7 LB: > { %s910_s16 = sadd.s32 4294967295, %s857_s15   ;;  %s594_s17 = sadd.s32 4294967294, %s857_s15   ;;  %s857_s15 = sphi %s895_s15, %s1326_s15   ;;  %s853_s14 = sphi %s893_s14, %s1325_s14   ;;  %s849_s13 = sphi %s891_s13, %s1324_s13   ;;  %s845_s12 = sphi %s889_s12, %s1323_s12  }
   0x8   : > { %s914_s18 = sadd.s32 1, %s857_s15   ;;  %s29_s19 = sadd.s32 1, %s853_s14 }
   0x9   : > { %s26_s20 = ssub.s32 %s857_s15, %s914_s18  ;;  %p36_p0 = scmp.ne.s32.totalorder %s853_s14, %s849_s13 }
   0xa   : > { %p27_p1 = scmp.eq.s32.totalorder %s26_s20, 0  ;;  %p37_p2 = scmp.eq.s32.totalorder %s857_s15, 0 }
   0xb   : > { %p42_p3 = scmp.ne.s32.totalorder %s849_s13, %s845_s12  ;;  %p43_p4 = scmp.eq.s32.totalorder %s910_s16, 0 }
   0xc   : > { %s926_s21 = scalar_select %p27_p1, %s853_s14, %s29_s19  }
   0xd   : > { %p928_p5 = por %p37_p2, %p36_p0  ;;  %p932_p6 = por %p43_p4, %p42_p3 }
   0xe   : > { %p118_p7 = scmp.eq.s32.totalorder %s910_s16, 1  ;;  %p124_p8 = scmp.eq.s32.totalorder %s594_s17, 1 }
   0xf   : > { %p1306_p11 = scmp.ge.s32.totalorder %s857_s15, 2 }
  0x10   : > { %p937_p9 = por %p118_p7, %p36_p0  ;;  %p941_p10 = por %p124_p8, %p42_p3 }
  0x11   : > { %140 = sbr.rel (%p1306_p11) target bundleno = 129 (0x81), region = 16 }
  0x12   : > { %s1310_s24 = scalar_select %p937_p9, 1, 0 }
  0x13   : > { %s1311_s25 = scalar_select %p941_p10, 1, 0 }
  0x18   : > { %143 = sbr.rel (!%p928_p5) target bundleno = 59 (0x3b), region = 20  ;;  %s144_s26 = sand.u32 (%p928_p5), 1, %s853_s14  }
  0x19   : > { %s598_s27 = sshll.u32 (%p928_p5), %s857_s15, 2  ;;  %s597_s28 = sshll.u32 (%p928_p5), %s144_s26, 5 }
  0x1a   : > { %s150_s29 = ssub.s32 (%p928_p5), 7, %s598_s27  ;;  %s955_s5 = scalar_lea.sflag (%p928_p5), [#allocation3], %s144_s26 }
  0x1b   : > { %p151_p12 = scmp.lt.s32.totalorder (%p928_p5), %s150_s29, 4  ;;  %s148_s6 = scalar_lea.vmem (%p928_p5), [#allocation2], %s597_s28 }
  0x1f   : > { %s1328_s29 = smov (!%p151_p12, %s150_s29), 4 }
  0x20   : > { %s952_s30 = sshll.u32 %s1328_s29, 7 }
  0x21   : > { %s155_s4 = ssub.s32 512, %s952_s30 }
  0x22   : > { %156 = vsyncadd %s955_s5, %s155_s4  ;;  %p600_p13 = scmp.ne.s32.totalorder %s952_s30, 0  ;;  %s628_s7 = sshll.u32 %s857_s15, 9 }
  0x23   : > { %s963_s10 = scalar_lea.hbm %s1302_s0, %s628_s7  ;;  %s161_s11 = sshll.u32 %s148_s6, 4  ;;  %s965_s11 = int_to_ptr.vmem [resolvable:$true] %s161_s11 }
  0x24   : > { %s703_s17 = scalar_lea.hbm %s963_s10, %s952_s30  ;;  %s707_s26 = scalar_lea.hbm %s1302_s0, 896 }
  0x25   : > { %p704_p0 = scmp.ne.s32.totalorder %s963_s10, %s703_s17  ;;  %p708_p3 = scmp.lt.u32.totalorder %s963_s10, %s1302_s0 }
  0x26   : > { %p709_p4 = scmp.lt.u32.totalorder %s707_s26, %s703_s17  ;;  %p711_p8 = scmp.lt.u32.totalorder %s703_s17, %s963_s10 }
  0x27   : > { %p705_p1 = pnand %p704_p0, %p600_p13 }
  0x28   : > { %p710_p7 = por %p709_p4, %p708_p3 }
  0x29   : > { %p706_p2 = pneg %p705_p1 }
  0x2a   : > { %p712_p12 = por %p711_p8, %p710_p7 }
  0x2c   : > { %p713_p11 = pnand %p712_p12, %p706_p2 }
  0x2e   : > { %716 = shalt.err (!%p713_p11)
}
  0x2f   : > { %s717_s29 = scalar_lea.vmem %s965_s11, %s952_s30  ;;  %s859_s4 = smov [#allocation2]  }
  0x30   : > { %p718_p0 = scmp.ne.s32.totalorder %s965_s11, %s717_s29  ;;  %s721_s6 = sshll.u32 %s859_s4, 4  ;;  %s722_s6 = int_to_ptr.vmem [resolvable:$false] %s721_s6 }
  0x31   : > { %s723_s7 = scalar_lea.vmem %s722_s6, 1024  ;;  %p724_p9 = scmp.lt.s32.totalorder %s965_s11, %s722_s6 }
  0x32   : > { %p719_p1 = pnand %p718_p0, %p600_p13  ;;  %p725_p3 = scmp.lt.s32.totalorder %s723_s7, %s717_s29 }
  0x34   : > { %p720_p10 = pneg %p719_p1  ;;  %p726_p4 = por %p725_p3, %p724_p9 }
  0x36   : > { %p727_p7 = pnand %p726_p4, %p720_p10 }
  0x38   : > { %730 = shalt.err (!%p727_p7)
}
  0x39   : > { %s860_s8 = smov 128   ;;  %s861_s9 = smov 8  }
  0x3a   : > { %167 = dma.hbm_to_vmem [thread:$0]  (%p600_p13), %s963_s10, %s952_s30, %s965_s11, %s955_s5, %s860_s8, %s860_s8, %s861_s9  }
  0x3b PF: > { %170 = sbr.rel (!%p928_p5) target bundleno = 94 (0x5e), region = 24  ;;  %s171_s17 = sand.u32 (%p928_p5), 1, %s857_s15  }
  0x3c   : > { %s173_s19 = sand.u32 (%p928_p5), 1, %s853_s14   ;;  %s605_s26 = sshll.u32 (%p928_p5), %s857_s15, 2 }
  0x3d   : > { %s604_s20 = sshll.u32 (%p928_p5), %s173_s19, 5  ;;  %s177_s27 = ssub.s32 (%p928_p5), 7, %s605_s26 }
  0x3e   : > { %p178_p9 = scmp.lt.s32.totalorder (%p928_p5), %s177_s27, 4  ;;  %s1000_s4 = scalar_lea.sflag (%p928_p5), [#allocation6], %s171_s17 }
  0x3f   : > { %s175_s30 = scalar_lea.vmem (%p928_p5), [#allocation5], %s604_s20 }
  0x42   : > { %s1330_s27 = smov (!%p178_p9, %s177_s27), 4 }
  0x43   : > { %s997_s28 = sshll.u32 %s1330_s27, 7 }
  0x44   : > { %s182_s29 = ssub.s32 512, %s997_s28 }
  0x45   : > { %183 = vsyncadd %s1000_s4, %s182_s29  ;;  %p607_p10 = scmp.ne.s32.totalorder %s997_s28, 0  ;;  %s629_s5 = sshll.u32 %s857_s15, 9 }
  0x46   : > { %s1008_s6 = scalar_lea.hbm %s1303_s1, %s629_s5  ;;  %s188_s7 = sshll.u32 %s175_s30, 4  ;;  %s1010_s7 = int_to_ptr.vmem [resolvable:$true] %s188_s7 }
  0x47   : > { %s731_s8 = scalar_lea.hbm %s1008_s6, %s997_s28  ;;  %s735_s19 = scalar_lea.hbm %s1303_s1, 896 }
  0x48   : > { %p732_p11 = scmp.ne.s32.totalorder %s1008_s6, %s731_s8  ;;  %p736_p8 = scmp.lt.u32.totalorder %s1008_s6, %s1303_s1 }
  0x49   : > { %p737_p12 = scmp.lt.u32.totalorder %s735_s19, %s731_s8  ;;  %p739_p1 = scmp.lt.u32.totalorder %s731_s8, %s1008_s6 }
  0x4a   : > { %p733_p13 = pnand %p732_p11, %p607_p10 }
  0x4b   : > { %p738_p0 = por %p737_p12, %p736_p8 }
  0x4c   : > { %p734_p2 = pneg %p733_p13 }
  0x4d   : > { %p740_p3 = por %p739_p1, %p738_p0 }
  0x4f   : > { %p741_p4 = pnand %p740_p3, %p734_p2 }
  0x51   : > { %744 = shalt.err (!%p741_p4)
}
  0x52   : > { %s745_s27 = scalar_lea.vmem %s1010_s7, %s997_s28  ;;  %s862_s29 = smov [#allocation5]  }
  0x53   : > { %p746_p7 = scmp.ne.s32.totalorder %s1010_s7, %s745_s27  ;;  %s749_s30 = sshll.u32 %s862_s29, 4  ;;  %s750_s30 = int_to_ptr.vmem [resolvable:$false] %s749_s30 }
  0x54   : > { %s751_s5 = scalar_lea.vmem %s750_s30, 1024  ;;  %p752_p13 = scmp.lt.s32.totalorder %s1010_s7, %s750_s30 }
  0x55   : > { %p747_p9 = pnand %p746_p7, %p607_p10  ;;  %p753_p8 = scmp.lt.s32.totalorder %s751_s5, %s745_s27 }
  0x57   : > { %p748_p11 = pneg %p747_p9  ;;  %p754_p12 = por %p753_p8, %p752_p13 }
  0x59   : > { %p755_p0 = pnand %p754_p12, %p748_p11 }
  0x5b   : > { %758 = shalt.err (!%p755_p0)
}
  0x5c   : > { %s863_s10 = smov 128   ;;  %s864_s11 = smov 8  }
  0x5d   : > { %194 = dma.hbm_to_vmem [thread:$0]  (%p607_p10), %s1008_s6, %s997_s28, %s1010_s7, %s1000_s4, %s863_s10, %s863_s10, %s864_s11  }
  0x5e PF: > { %197 = sbr.rel (!%p928_p5) target bundleno = 129 (0x81), region = 28  ;;  %s198_s8 = sand.u32 (%p928_p5), 1, %s857_s15  }
  0x5f   : > { %s200_s9 = sand.u32 (%p928_p5), 1, %s853_s14   ;;  %s612_s19 = sshll.u32 (%p928_p5), %s857_s15, 2 }
  0x60   : > { %s611_s17 = sshll.u32 (%p928_p5), %s200_s9, 5  ;;  %s204_s20 = ssub.s32 (%p928_p5), 7, %s612_s19 }
  0x61   : > { %p205_p2 = scmp.lt.s32.totalorder (%p928_p5), %s204_s20, 4  ;;  %s1045_s29 = scalar_lea.sflag (%p928_p5), [#allocation6], %s198_s8 }
  0x62   : > { %s202_s28 = scalar_lea.vmem (%p928_p5), [#allocation7], %s611_s17 }
  0x65   : > { %s1332_s20 = smov (!%p205_p2, %s204_s20), 4 }
  0x66   : > { %s1042_s26 = sshll.u32 %s1332_s20, 7 }
  0x67   : > { %s209_s27 = ssub.s32 512, %s1042_s26 }
  0x68   : > { %210 = vsyncadd %s1045_s29, %s209_s27  ;;  %p614_p5 = scmp.ne.s32.totalorder %s1042_s26, 0  ;;  %s630_s22 = sshll.u32 %s857_s15, 9 }
  0x69   : > { %s1053_s7 = scalar_lea.hbm %s1304_s2, %s630_s22  ;;  %s215_s30 = sshll.u32 %s202_s28, 4  ;;  %s1055_s30 = int_to_ptr.vmem [resolvable:$true] %s215_s30 }
  0x6a   : > { %s759_s5 = scalar_lea.hbm %s1053_s7, %s1042_s26  ;;  %s763_s8 = scalar_lea.hbm %s1304_s2, 896 }
  0x6b   : > { %p760_p10 = scmp.ne.s32.totalorder %s1053_s7, %s759_s5  ;;  %p764_p4 = scmp.lt.u32.totalorder %s1053_s7, %s1304_s2 }
  0x6c   : > { %p765_p7 = scmp.lt.u32.totalorder %s763_s8, %s759_s5  ;;  %p767_p11 = scmp.lt.u32.totalorder %s759_s5, %s1053_s7 }
  0x6d   : > { %p761_p1 = pnand %p760_p10, %p614_p5 }
  0x6e   : > { %p766_p9 = por %p765_p7, %p764_p4 }
  0x6f   : > { %p762_p3 = pneg %p761_p1 }
  0x70   : > { %p768_p13 = por %p767_p11, %p766_p9 }
  0x72   : > { %p769_p8 = pnand %p768_p13, %p762_p3 }
  0x74   : > { %772 = shalt.err (!%p769_p8)
}
  0x75   : > { %s773_s19 = scalar_lea.vmem %s1055_s30, %s1042_s26  ;;  %s865_s20 = smov [#allocation7]  }
  0x76   : > { %p774_p12 = scmp.ne.s32.totalorder %s1055_s30, %s773_s19  ;;  %s777_s27 = sshll.u32 %s865_s20, 4  ;;  %s778_s27 = int_to_ptr.vmem [resolvable:$false] %s777_s27 }
  0x77   : > { %s779_s28 = scalar_lea.vmem %s778_s27, 1024  ;;  %p780_p10 = scmp.lt.s32.totalorder %s1055_s30, %s778_s27 }
  0x78   : > { %p775_p0 = pnand %p774_p12, %p614_p5  ;;  %p781_p1 = scmp.lt.s32.totalorder %s779_s28, %s773_s19 }
  0x7a   : > { %p776_p2 = pneg %p775_p0  ;;  %p782_p4 = por %p781_p1, %p780_p10 }
  0x7c   : > { %p783_p7 = pnand %p782_p4, %p776_p2 }
  0x7e   : > { %786 = shalt.err (!%p783_p7)
}
  0x7f   : > { %s866_s22 = smov 128   ;;  %s867_s4 = smov 8  }
  0x80   : > { %221 = dma.hbm_to_vmem [thread:$0]  (%p614_p5), %s1053_s7, %s1042_s26, %s1055_s30, %s1045_s29, %s866_s22, %s866_s22, %s867_s4  }
  0x81 PF: > { %p618_p3 = scmp.ge.s32.totalorder %s857_s15, 1  ;;  %p223_p9 = scmp.lt.s32.totalorder %s857_s15, 3 }
  0x83   : > { %p224_p11 = pnand %p618_p3, %p223_p9 }
  0x84   : > { %s1085_s6 = sand.u32 (!%p224_p11), 1, %s849_s13  }
  0x85   : > { %227 = sbr.rel (%p224_p11) target bundleno = 221 (0xdd), region = 32  ;;  %s1088_s5 = sshll.u32 (!%p224_p11), %s1085_s6, 5 }
  0x86   : > { %s230_s10 = scalar_lea.sflag (!%p224_p11), [#allocation3], %s1085_s6  ;;  %s233_s11 = scalar_lea.vmem (!%p224_p11), [#allocation2], %s1088_s5 }
  0x8c   : > { %832 = dma.done.wait (%p932_p6), %s230_s10, 512  }
  0x8d   : > { %834 = vsyncadd (%p932_p6), %s230_s10, 4294966784  ;;  %s238_s26 = sand.u32 1, %s910_s16   ;;  %s1098_s7 = scalar_lea.vmem [#allocation5], %s1088_s5 }
  0x8e   : > { %s239_s29 = scalar_lea.sflag [#allocation6], %s238_s26 }
  0x8f   : > { %836 = dma.done.wait (%p932_p6), %s239_s29, 1024  }
  0x90   : > { %838 = vsyncadd (%p932_p6), %s239_s29, 4294966272  ;;  %v313_v0 = vlaneseq  ;;  %s623_s30 = sshll.u32 %s910_s16, 5  ;;  %v299_v6 = vld [vmem:[%s233_s11] sm:$0xff]  ;;  %v300_v7 = vld [vmem:[%s233_s11 + $0x8] sm:$0xff]  ;;  %s251_s23 = scalar_lea.vmem [#allocation7], %s1088_s5 }
  0x91   : > { %s312_s8 = ssub.s32 50, %s623_s30  ;;  %v301_v8 = vld [vmem:[%s233_s11 + $0x10] sm:$0xff]  ;;  %v302_v9 = vld [vmem:[%s233_s11 + $0x18] sm:$0xff]  ;;  %v303_v33 = vld [vmem:[%s1098_s7] sm:$0xff]  ;;  %s622_s9 = sshll.u32 %s1085_s6, 3 }
  0x92   : > { %v314_v1 = vshrl.u32 %v313_v0, 7  ;;  %v318_v2 = vstv %s312_s8  ;;  %v307_v35 = vld [vmem:[%s251_s23] sm:$0xff]  ;;  %v308_v36 = vld [vmem:[%s251_s23 + $0x8] sm:$0xff]  ;;  %v309_v37 = vld [vmem:[%s251_s23 + $0x10] sm:$0xff]  ;;  %s283_s17 = scalar_lea.vmem [#allocation8], %s622_s9  ;;  %s625_s20 = sshll.u32 %s910_s16, 7 }
  0x93   : > { %v304_v38 = vld [vmem:[%s1098_s7 + $0x8] sm:$0xff]  ;;  %v305_v39 = vld [vmem:[%s1098_s7 + $0x10] sm:$0xff]  ;;  %v306_v40 = vld [vmem:[%s1098_s7 + $0x18] sm:$0xff]  ;;  %s481_s19 = sshll.u32 %s283_s17, 4  ;;  %s1260_s22 = scalar_lea.hbm %s1305_s3, %s625_s20  ;;  %s1255_s19 = int_to_ptr.vmem [resolvable:$true] %s481_s19 }
  0x94   : > { %v315_v3 = vadd.s32 8, %v314_v1  ;;  %v316_v4 = vadd.s32 16, %v314_v1  ;;  %v317_v5 = vadd.s32 24, %v314_v1  ;;  %vm319_vm0 = vcmp.lt.s32.totalorder %v314_v1, %v318_v2  ;;  %v310_v41 = vld [vmem:[%s251_s23 + $0x18] sm:$0xff]  ;;  %s468_s4 = scalar_lea.sflag [#allocation4], %s1085_s6  ;;  %s787_s5 = scalar_lea.vmem %s1255_s19, 128 }
  0x95   : > { %v1106_v10 = vsel %vm319_vm0, %v299_v6, -10000.0  ;;  %v327_v42 = vsel %vm319_vm0, %v303_v33, 0.0  ;;  %v1145_v43 = vsel %vm319_vm0, %v307_v35, 0.0  ;;  %p788_p6 = scmp.ne.s32.totalorder %s1255_s19, %s787_s5  ;;  %p1320_p5 = scmp.ne.s32.totalorder %s1310_s24, 0 }
  0x96   : > { %vm320_vm1 = vcmp.lt.s32.totalorder %v315_v3, %v318_v2  ;;  %vm321_vm2 = vcmp.lt.s32.totalorder %v316_v4, %v318_v2  ;;  %vm322_vm3 = vcmp.lt.s32.totalorder %v317_v5, %v318_v2  ;;  %v335_v14 = vand.u32 2147483647, %v1106_v10  ;;  %s868_s16 = smov [#allocation8]  }
  0x97   : > { %v1109_v11 = vsel %vm320_vm1, %v300_v7, -10000.0  ;;  %v1112_v12 = vsel %vm321_vm2, %v301_v8, -10000.0  ;;  %v1115_v13 = vsel %vm322_vm3, %v302_v9, -10000.0  ;;  %v1148_v44 = vsel %vm320_vm1, %v308_v36, 0.0  ;;  %p789_p13 = pnand %p788_p6, %p1320_p5  ;;  %s791_s10 = sshll.u32 %s868_s16, 4  ;;  %s792_s10 = int_to_ptr.vmem [resolvable:$false] %s791_s10 }
  0x98   : > { %v336_v15 = vand.u32 2147483647, %v1109_v11  ;;  %v337_v16 = vand.u32 2147483647, %v1112_v12  ;;  %v338_v17 = vand.u32 2147483647, %v1115_v13  ;;  %v1163_v50 = vmul.f32 %v1145_v43, %v327_v42  ;;  %p794_p12 = scmp.lt.s32.totalorder %s1255_s19, %s792_s10 }
  0x99   : > { %v339_v18 = vsub.f32 0.0, %v335_v14  ;;  %v1151_v45 = vsel %vm321_vm2, %v309_v37, 0.0  ;;  %v328_v46 = vsel %vm320_vm1, %v304_v38, 0.0  ;;  %v329_v47 = vsel %vm321_vm2, %v305_v39, 0.0  ;;  %p790_p8 = pneg %p789_p13  ;;  %s793_s11 = scalar_lea.vmem %s792_s10, 256 }
  0x9a   : > { %v340_v19 = vsub.f32 0.0, %v336_v15  ;;  %v341_v20 = vsub.f32 0.0, %v337_v16  ;;  %v342_v21 = vsub.f32 0.0, %v338_v17  ;;  %v1157_v48 = vsel %vm322_vm3, %v306_v40, 0.0  ;;  %p795_p0 = scmp.lt.s32.totalorder %s793_s11, %s787_s5 }
  0x9b   : > { %v343_v22 = vmul.f32 1.442695, %v339_v18  ;;  %v1160_v49 = vsel %vm322_vm3, %v310_v41, 0.0  ;;  %v447_v51 = vmul.f32 %v327_v42, %v1106_v10  ;;  %v427_v52 = vsub.f32 1.0, %v1145_v43 }
  0x9c   : > { %v345_v23 = vmul.f32 1.442695, %v340_v19  ;;  %v347_v24 = vmul.f32 1.442695, %v341_v20  ;;  %v349_v25 = vmul.f32 1.442695, %v342_v21  ;;  %v448_v60 = vmul.f32 %v328_v46, %v1109_v11  ;;  %p796_p2 = por %p795_p0, %p794_p12 }
  0x9d   : > { %679 = vpow2.f32 %v343_v22  ;;  %v428_v53 = vsub.f32 1.0, %v1148_v44  ;;  %v429_v54 = vsub.f32 1.0, %v1151_v45  ;;  %v443_v56 = vmax.f32 %v1106_v10, 0.0 }
  0x9e   : > { %681 = vpow2.f32 %v345_v23  ;;  %v444_v57 = vmax.f32 %v1109_v11, 0.0  ;;  %vm407_vm4 = vcmp.ge.f32.partialorder %v1106_v10, 0.0  ;;  %v445_v59 = vmax.f32 %v1112_v12, 0.0  ;;  %p797_p10 = pnand %p796_p2, %p790_p8 }
  0x9f   : > { %683 = vpow2.f32 %v347_v24  ;;  %v449_v61 = vmul.f32 %v329_v47, %v1112_v12  ;;  %vm408_vm5 = vcmp.ge.f32.partialorder %v1109_v11, 0.0  ;;  %v430_v63 = vsub.f32 1.0, %v1160_v49 }
  0xa0   : > { %685 = vpow2.f32 %v349_v25  ;;  %v1183_v0 = vmul.f32 %v1148_v44, %v328_v46  ;;  %v1186_v1 = vmul.f32 %v1151_v45, %v329_v47  ;;  %vm409_vm6 = vcmp.ge.f32.partialorder %v1112_v12, 0.0 }
  0xa1   : > { %v446_v5 = vmax.f32 %v1115_v13, 0.0  ;;  %v450_v6 = vmul.f32 %v1157_v48, %v1115_v13  ;;  %vm410_vm7 = vcmp.ge.f32.partialorder %v1115_v13, 0.0  ;;  %v451_v15 = vsub.f32 %v443_v56, %v447_v51 }
  0xa2   : > { %v452_v19 = vsub.f32 %v444_v57, %v448_v60  ;;  %v453_v20 = vsub.f32 %v445_v59, %v449_v61 }
  0xa7   : > { %v1121_v26 = vpop.eup %679 }
  0xa8   : > { %v1123_v27 = vpop.eup %681  ;;  %v351_v30 = vadd.f32 1.0, %v1121_v26  ;;  %v354_v55 = vmul.f32 -0.5, %v1121_v26  ;;  %v357_v62 = vand.u32 2147483647, %v1121_v26 }
  0xa9   : > { %v1125_v28 = vpop.eup %683  ;;  %v360_v31 = vadd.f32 1.0, %v1123_v27  ;;  %v363_v58 = vmul.f32 -0.5, %v1123_v27  ;;  %v366_v3 = vand.u32 2147483647, %v1123_v27 }
  0xaa   : > { %v1127_v29 = vpop.eup %685  ;;  %v1132_v32 = vadd.f32 1.0, %v1125_v28  ;;  %687 = vrcp.f32 %v351_v30  ;;  %v372_v4 = vmul.f32 -0.5, %v1125_v28  ;;  %v355_v8 = vadd.f32 1.0, %v354_v55 }
  0xab   : > { %v1136_v34 = vadd.f32 1.0, %v1127_v29  ;;  %689 = vrcp.f32 %v360_v31  ;;  %v381_v9 = vmul.f32 -0.5, %v1127_v29  ;;  %v364_v17 = vadd.f32 1.0, %v363_v58 }
  0xac   : > { %691 = vrcp.f32 %v1132_v32  ;;  %vm1196_vm8 = vcmp.lt.f32.partialorder %v357_v62, 0.0004427343  ;;  %v375_v23 = vand.u32 2147483647, %v1125_v28  ;;  %vm1202_vm9 = vcmp.lt.f32.partialorder %v366_v3, 0.0004427343 }
  0xad   : > { %693 = vrcp.f32 %v1136_v34  ;;  %v373_v35 = vadd.f32 1.0, %v372_v4  ;;  %v356_v38 = vmul.f32 %v1121_v26, %v355_v8  ;;  %v382_v39 = vadd.f32 1.0, %v381_v9 }
  0xae   : > { %695 = vlog2.f32 %v351_v30  ;;  %v365_v46 = vmul.f32 %v1123_v27, %v364_v17  ;;  %vm1210_vm10 = vcmp.lt.f32.partialorder %v375_v23, 0.0004427343 }
  0xaf   : > { %697 = vlog2.f32 %v360_v31  ;;  %v374_v60 = vmul.f32 %v1125_v28, %v373_v35  ;;  %v383_v3 = vmul.f32 %v1127_v29, %v382_v39 }
  0xb0   : > { %699 = vlog2.f32 %v1132_v32 }
  0xb1   : > { %701 = vlog2.f32 %v1136_v34 }
  0xb4   : > { %v688_v2 = vpop.eup %687 }
  0xb5   : > { %v690_v7 = vpop.eup %689  ;;  %v395_v14 = vmul.f32 %v688_v2, %v351_v30 }
  0xb6   : > { %v692_v16 = vpop.eup %691  ;;  %v396_v18 = vmul.f32 %v690_v7, %v360_v31 }
  0xb7   : > { %v694_v21 = vpop.eup %693  ;;  %v397_v24 = vmul.f32 %v692_v16, %v1132_v32  ;;  %v399_v25 = vsub.f32 2.0, %v395_v14  ;;  %v384_v32 = vand.u32 2147483647, %v1127_v29 }
  0xb8   : > { %v696_v33 = vpop.eup %695  ;;  %v398_v31 = vmul.f32 %v694_v21, %v1136_v34  ;;  %v400_v36 = vsub.f32 2.0, %v396_v18 }
  0xb9   : > { %v698_v37 = vpop.eup %697  ;;  %v401_v40 = vsub.f32 2.0, %v397_v24  ;;  %v403_v41 = vmul.f32 %v688_v2, %v399_v25  ;;  %v353_v56 = vmul.f32 0.6931472, %v696_v33  ;;  %vm1226_vm11 = vcmp.lt.f32.partialorder %v384_v32, 0.0004427343 }
  0xba   : > { %v700_v42 = vpop.eup %699  ;;  %v402_v47 = vsub.f32 2.0, %v398_v31  ;;  %v404_v51 = vmul.f32 %v690_v7, %v400_v36  ;;  %v362_v59 = vmul.f32 0.6931472, %v698_v37  ;;  %v454_v24 = vsub.f32 %v446_v5, %v450_v6 }
  0xbb   : > { %v702_v55 = vpop.eup %701  ;;  %v405_v34 = vmul.f32 %v692_v16, %v401_v40  ;;  %v411_v58 = vmul.f32 %v1121_v26, %v403_v41  ;;  %v371_v2 = vmul.f32 0.6931472, %v700_v42  ;;  %v359_v16 = vsel %vm1196_vm8, %v356_v38, %v353_v56 }
  0xbc   : > { %v406_v61 = vmul.f32 %v694_v21, %v402_v47  ;;  %v412_v62 = vmul.f32 %v1123_v27, %v404_v51  ;;  %v380_v8 = vmul.f32 0.6931472, %v702_v55  ;;  %v368_v17 = vsel %vm1202_vm9, %v365_v46, %v362_v59 }
  0xbd   : > { %v413_v4 = vmul.f32 %v1125_v28, %v405_v34  ;;  %v415_v7 = vsel %vm407_vm4, %v403_v41, %v411_v58  ;;  %v377_v21 = vsel %vm1210_vm10, %v374_v60, %v371_v2  ;;  %v455_v30 = vadd.f32 %v451_v15, %v359_v16 }
  0xbe   : > { %v414_v9 = vmul.f32 %v1127_v29, %v406_v61  ;;  %v416_v26 = vsel %vm408_vm5, %v404_v51, %v412_v62  ;;  %v419_v14 = vmul.f32 %v415_v7, %v415_v7  ;;  %v386_v25 = vsel %vm1226_vm11, %v383_v3, %v380_v8 }
  0xbf   : > { %v417_v28 = vsel %vm409_vm6, %v405_v34, %v413_v4  ;;  %v420_v10 = vmul.f32 %v416_v26, %v416_v26  ;;  %v438_v31 = vmul.f32 %v1160_v49, %v1157_v48  ;;  %v456_v36 = vadd.f32 %v452_v19, %v368_v17 }
  0xc0   : > { %v418_v11 = vsel %vm410_vm7, %v406_v61, %v414_v9  ;;  %v421_v29 = vmul.f32 %v417_v28, %v417_v28  ;;  %v423_v18 = vmul.f32 0.75, %v419_v14  ;;  %v457_v37 = vadd.f32 %v453_v20, %v377_v21 }
  0xc1   : > { %v422_v22 = vmul.f32 %v418_v11, %v418_v11  ;;  %v424_v23 = vmul.f32 0.75, %v420_v10  ;;  %v458_v15 = vadd.f32 %v454_v24, %v386_v25 }
  0xc2   : > { %v425_v12 = vmul.f32 0.75, %v421_v29  ;;  %v431_v33 = vmul.f32 %v427_v52, %v423_v18 }
  0xc3   : > { %v426_v35 = vmul.f32 0.75, %v422_v22  ;;  %v432_v13 = vmul.f32 %v428_v53, %v424_v23 }
  0xc4   : > { %v433_v5 = vmul.f32 %v429_v54, %v425_v12  ;;  %v439_v6 = vadd.f32 %v1163_v50, %v431_v33 }
  0xc5   : > { %v434_v43 = vmul.f32 %v430_v63, %v426_v35  ;;  %v440_v52 = vadd.f32 %v1183_v0, %v432_v13 }
  0xc6   : > { %v441_v44 = vadd.f32 %v1186_v1, %v433_v5  ;;  %v459_v53 = vmul.f32 %v455_v30, %v439_v6 }
  0xc7   : > { %v442_v38 = vadd.f32 %v438_v31, %v434_v43  ;;  %v460_v48 = vmul.f32 %v456_v36, %v440_v52 }
  0xc8   : > { %v461_v19 = vmul.f32 %v457_v37, %v441_v44 }
  0xc9   : > { %v462_v45 = vmul.f32 %v458_v15, %v442_v38  ;;  %v463_v39 = vadd.f32 %v460_v48, %v459_v53 }
  0xcb   : > { %v464_v50 = vadd.f32 %v463_v39, %v461_v19 }
  0xcd   : > { %v465_v49 = vadd.f32 %v464_v50, %v462_v45 }
  0xcf   : > { %466 = vst [vmem:[%s283_s17] sm:$0xff] %v465_v49 }
  0xd0   : > { %800 = shalt.err (!%p797_p10)
}
  0xd1   : > { %s801_s6 = scalar_lea.hbm %s1260_s22, 128  ;;  %s805_s7 = scalar_lea.hbm %s1305_s3, 256 }
  0xd2   : > { %p802_p1 = scmp.ne.s32.totalorder %s1260_s22, %s801_s6  ;;  %p806_p3 = scmp.lt.u32.totalorder %s1260_s22, %s1305_s3 }
  0xd3   : > { %p807_p9 = scmp.lt.u32.totalorder %s805_s7, %s801_s6  ;;  %p809_p6 = scmp.lt.u32.totalorder %s801_s6, %s1260_s22 }
  0xd4   : > { %p803_p4 = pnand %p802_p1, %p1320_p5 }
  0xd5   : > { %p808_p11 = por %p807_p9, %p806_p3 }
  0xd6   : > { %p804_p7 = pneg %p803_p4 }
  0xd7   : > { %p810_p13 = por %p809_p6, %p808_p11 }
  0xd9   : > { %p811_p8 = pnand %p810_p13, %p804_p7 }
  0xdb   : > { %814 = shalt.err (!%p811_p8)
}
  0xdc   : > { %634 = dma.vmem_to_hbm [thread:$0]  (%p1320_p5), %s1255_s19, 128, %s1260_s22, %s468_s4  }
  0xdd PF: > { %s493_s23 = sand.u32 1, %s845_s12   ;;  %p1321_p12 = scmp.ne.s32.totalorder %s1311_s25, 0 }
  0xde   : > { %p1322_p0 = scmp.ge.s32.totalorder %s857_s15, 2  ;;  %s494_s9 = scalar_lea.sflag [#allocation4], %s493_s23 }
  0xe0   : > { %p637_p2 = pnand %p1322_p0, %p1321_p12 }
  0xe2   : > { %840 = dma.done.wait (!%p637_p2), %s494_s9, 128  }
  0xe3   : > { %842 = vsyncadd (!%p637_p2), %s494_s9, 4294967168  ;;  %p19_p10 = scmp.ge.s32.totalorder %s914_s18, 4   ;;  %s1323_s12 = smov %s849_s13 }
  0xe4   : > { %s1324_s13 = smov %s853_s14  ;;  %s1325_s14 = smov %s926_s21 }
  0xe5   : > { %s1326_s15 = smov %s914_s18  ;;  %21 = sbr.rel (!%p19_p10) target bundleno = 7 (0x7), region = 101 }
  0xec   :  { %499 = vsyncpa [#allocation3], 1 }
  0xed   :  { %501 = vsyncpa [#allocation3 + $0x1], 1 }
  0xee   :  { %502 = vsyncpa [#allocation6], 1 }
  0xef   :  { %504 = vsyncpa [#allocation6 + $0x1], 1 }
  0xf0   :  { %505 = vsyncpa [#allocation4], 1 }
  0xf1   :  { %507 = vsyncpa [#allocation4 + $0x1], 1 }

</bundles_post_ra>
